<compile_context>
chip_gen: v5e
topology: v5e:2x2
jax: 0.10.0
libtpu: 0.0.40
codegen_flags: <defaults>
</compile_context>

<pallas_src>
import functools

import jax
import jax.numpy as jnp
from jax.experimental import pallas as pl
from jax.experimental.pallas import tpu as pltpu


def _pick_tile(W):
    # Prefer a multiple-of-128 tile so input blocks are lane-aligned and v7x
    # gets a fine-grained parallel axis; otherwise take the full (small) dim.
    for tw in (256, 128):
        if W % tw == 0:
            return tw
    return W


def _cls_kernel(cls_ref, cls_out, scr_out):
    # cls_ref: (A, H, tw)  — per W-tile block of one frame's cls map.
    m = jnp.max(cls_ref[...], axis=0)            # (H, tw)  max over anchors
    mt = jnp.transpose(m, (1, 0))                # (tw, H)  single XLU transpose
    cls_out[...] = mt
    # exact sigmoid: exp on the EUP; keeps 1e-5 parity with torch.sigmoid.
    scr_out[...] = 1.0 / (1.0 + jnp.exp(-mt))


@functools.partial(jax.jit, static_argnums=())
def _run_cls(cls):
    # cls: (A, H, W) -> (cls_max (W, H), scr (W, H))
    A, H, W = cls.shape
    tw = _pick_tile(W)
    n_tiles = W // tw
    itemsize = jnp.dtype(cls.dtype).itemsize
    cost = pl.CostEstimate(
        flops=A * H * W,                                   # the max reduction
        transcendentals=H * W,                             # one exp per element
        bytes_accessed=(A * H * W + 2 * W * H) * itemsize,
    )
    return pl.pallas_call(
        _cls_kernel,
        grid=(n_tiles,),
        in_specs=[pl.BlockSpec((A, H, tw), lambda w: (0, 0, w))],
        out_specs=(
            pl.BlockSpec((tw, H), lambda w: (w, 0)),
            pl.BlockSpec((tw, H), lambda w: (w, 0)),
        ),
        out_shape=(
            jax.ShapeDtypeStruct((W, H), cls.dtype),
            jax.ShapeDtypeStruct((W, H), cls.dtype),
        ),
        compiler_params=pltpu.CompilerParams(
            dimension_semantics=("parallel",),
            vmem_limit_bytes=32 * 1024 * 1024,   # above v5e's 16 MiB scoped default
        ),
        cost_estimate=cost,
    )(cls)


def make_dense_to_sparse(lidar_range, voxel_size, stride):
    pix_x = float(voxel_size[0] * stride)
    pix_y = float(voxel_size[1] * stride)

    # --- get_centers(): input independent -> hoisted to trace time -----------
    xs = jnp.arange(lidar_range[0], lidar_range[3], pix_x, dtype=jnp.float32) + pix_x * 0.5
    ys = jnp.arange(lidar_range[1], lidar_range[4], pix_y, dtype=jnp.float32) + pix_y * 0.5
    gx, gy = jnp.meshgrid(xs, ys, indexing='ij')
    ctr = jnp.stack([gx, gy], axis=-1).reshape(-1, 2)          # (Nx*Ny, 2)

    def forward(frames):
        out_list = []
        for f in frames:                      # per-frame pallas_call: no jnp.stack copy
            cls, reg = f['cls'], f['reg']
            A, H, W = cls.shape
            R = reg.shape[0] // A

            # fused max-over-anchors + HW transpose + sigmoid (Pallas kernel)
            cls_t, scr_t = _run_cls(cls)                       # (W, H), (W, H)

            # ONE-pass relayout of the dominant tensor (single XLA transpose:
            # one HBM read + one write).  General non-minor permute + the
            # lane-collapsing reshape don't lower reliably inside Mosaic, and
            # fusing it naively would cost masked narrow-lane stores.
            reg_whar = jnp.transpose(reg.reshape(A, R, H, W), (3, 2, 0, 1))  # (W,H,A,R)

            out_list.append({
                'ctr': ctr,                                    # (Nx*Ny, 2), shared
                'cls': cls_t.reshape(W * H),                   # free contiguous reshape
                'reg': reg_whar.reshape(W * H, A, R),
                'scr': scr_t.reshape(W * H),
            })
        return out_list

    return forward


def reference(frames, lidar_range, voxel_size, stride):
    # Pure-JAX reference matching the PyTorch forward exactly.
    pix_x = voxel_size[0] * stride
    pix_y = voxel_size[1] * stride
    xs = jnp.arange(lidar_range[0], lidar_range[3], pix_x) + pix_x * 0.5
    ys = jnp.arange(lidar_range[1], lidar_range[4], pix_y) + pix_y * 0.5
    gx, gy = jnp.meshgrid(xs, ys, indexing='ij')
    ctr = jnp.stack([gx, gy], axis=-1).reshape(-1, 2)
    out = []
    for f in frames:
        cls, reg = f['cls'], f['reg']
        A, H, W = cls.shape
        c = jnp.max(jnp.transpose(cls, (0, 2, 1)), axis=0)         # (W, H)
        s = jax.nn.sigmoid(c)
        r = jnp.transpose(reg.reshape(A, -1, H, W), (3, 2, 0, 1))  # (W, H, A, R)
        out.append({'ctr': ctr,
                    'cls': c.reshape(-1),
                    'reg': r.reshape(W * H, A, -1),
                    'scr': s.reshape(-1)})
    return out


if __name__ == "__main__":
    key = jax.random.PRNGKey(0)
    # config (the module's only "parameters"), chosen so the center grid is 16x16
    data_info = {
        'lidar_range': [-8.0, -8.0, -3.0, 8.0, 8.0, 1.0],
        'voxel_size': [0.25, 0.25, 0.25],
    }
    stride = 4  # pix_x = pix_y = 1.0  -> Nx = Ny = 16

    A, R, H, W = 2, 8, 16, 16
    frames = []
    for _ in range(2):  # list of 2 "frames", matching the forward's loop over input
        key, k1, k2 = jax.random.split(key, 3)
        frames.append({
            'cls': jax.random.normal(k1, (A, H, W), jnp.float32),
            'reg': jax.random.normal(k2, (A * R, H, W), jnp.float32),
        })

    fwd = make_dense_to_sparse(data_info['lidar_range'], data_info['voxel_size'], stride)
    out = fwd(frames)
    jax.block_until_ready(out)

    # sanity: the hoisted center grid matches the feature-map footprint here
    assert out[0]['ctr'].shape[0] == H * W, (out[0]['ctr'].shape, H * W)

    ref = reference(frames, data_info['lidar_range'], data_info['voxel_size'], stride)
    for o, r in zip(out, ref):
        for name in ('ctr', 'cls', 'reg', 'scr'):
            assert o[name].shape == r[name].shape, (name, o[name].shape, r[name].shape)
            assert jnp.allclose(o[name], r[name], atol=1e-5, rtol=1e-5), name

    print("KERNEL_OK")
</pallas_src>

<mosaic_0001>
module attributes {stable_mosaic.version = 11 : i64} {
  func.func @_cls_kernel(%arg0: i32, %arg1: memref<2x16x16xf32, #tpu.memory_space<vmem>>, %arg2: memref<16x16xf32, #tpu.memory_space<vmem>>, %arg3: memref<16x16xf32, #tpu.memory_space<vmem>>) attributes {dimension_semantics = [#tpu.dimension_semantics<parallel>], iteration_bounds = array<i64: 1>, scalar_prefetch = 0 : i64, scratch_operands = 0 : i64, tpu.core_type = #tpu.core_type<tc>, window_params = [{transform_indices = @transform_0, window_bounds = array<i64: 2, 16, 16>}, {transform_indices = @transform_1, window_bounds = array<i64: 16, 16>}, {transform_indices = @transform_2, window_bounds = array<i64: 16, 16>}]} {
    %c0 = arith.constant 0 : index
    %c0_0 = arith.constant 0 : index
    %c0_1 = arith.constant 0 : index
    %0 = vector.load %arg1[%c0, %c0_0, %c0_1] : memref<2x16x16xf32, #tpu.memory_space<vmem>>, vector<2x16x16xf32>
    %cst = arith.constant dense<0xFF800000> : vector<16x16xf32>
    %1 = vector.multi_reduction <maximumf>, %0, %cst [0] : vector<2x16x16xf32> to vector<16x16xf32>
    %2 = tpu.transpose %1, [1, 0] : vector<16x16xf32> -> vector<16x16xf32>
    %c0_2 = arith.constant 0 : index
    %c0_3 = arith.constant 0 : index
    %3 = vector.load %arg2[%c0_2, %c0_3] : memref<16x16xf32, #tpu.memory_space<vmem>>, vector<16x16xf32>
    tpu.vector_store %arg2[%c0_2, %c0_3], %2 {strides = array<i32>} : memref<16x16xf32, #tpu.memory_space<vmem>>, vector<16x16xf32>,
    %cst_4 = arith.constant 0.000000e+00 : f32
    %4 = vector.broadcast %cst_4 : f32 to vector<16x16xf32>
    %5 = arith.subf %4, %2 : vector<16x16xf32>
    %6 = math.exp %5 : vector<16x16xf32>
    %cst_5 = arith.constant 1.000000e+00 : f32
    %7 = vector.broadcast %cst_5 : f32 to vector<16x16xf32>
    %8 = arith.addf %7, %6 : vector<16x16xf32>
    %cst_6 = arith.constant 1.000000e+00 : f32
    %9 = vector.broadcast %cst_6 : f32 to vector<16x16xf32>
    %10 = arith.divf %9, %8 : vector<16x16xf32>
    %c0_7 = arith.constant 0 : index
    %c0_8 = arith.constant 0 : index
    %11 = vector.load %arg3[%c0_7, %c0_8] : memref<16x16xf32, #tpu.memory_space<vmem>>, vector<16x16xf32>
    tpu.vector_store %arg3[%c0_7, %c0_8], %10 {strides = array<i32>} : memref<16x16xf32, #tpu.memory_space<vmem>>, vector<16x16xf32>,
    return
  }
  func.func @transform_0(%arg0: i32) -> (i32, i32, i32) {
    %c0_i32 = arith.constant 0 : i32
    %c0_i32_0 = arith.constant 0 : i32
    %c0_i32_1 = arith.constant 0 : i32
    return %c0_i32, %c0_i32_0, %arg0 : i32, i32, i32
  }
  func.func @transform_1(%arg0: i32) -> (i32, i32) {
    %c0_i32 = arith.constant 0 : i32
    %c0_i32_0 = arith.constant 0 : i32
    return %arg0, %c0_i32 : i32, i32
  }
  func.func @transform_2(%arg0: i32) -> (i32, i32) {
    %c0_i32 = arith.constant 0 : i32
    %c0_i32_0 = arith.constant 0 : i32
    return %arg0, %c0_i32 : i32, i32
  }
}

</mosaic_0001>

<bundles_post_ra>
// kernel: _run_cls.1
= control target key start
LH: loop header
LB: loop body
LE: loop exit
PB: predicated region body
PF: predicated region fallthrough
CT: control target
= control target key end

     0   :  { %8 = vsyncpa [#allocation3], 0  ;;  %s288_s0 = inlined_call_operand.hbm [shape: f32[2,16,16], index: 0, kind: input, shape index: {}]   ;;  %s289_s1 = inlined_call_operand.hbm [shape: f32[16,16], index: 1, kind: output, shape index: {0}]   ;;  %s290_s2 = inlined_call_operand.hbm [shape: f32[16,16], index: 2, kind: output, shape index: {1}]  }
   0x1   :  { %9 = vsyncpa [#allocation4], 0 }
   0x2   :  { %10 = vsyncpa [#allocation7], 0  ;;  %s15_s11 = sshll.u32 %s288_s0, 4  ;;  %s242_s12 = smov [#allocation2]   ;;  %s16_s11 = int_to_ptr.hbm [resolvable:$true] %s15_s11 }
   0x3   :  { %s17_s13 = sshll.u32 %s242_s12, 4  ;;  %s243_s14 = smov 128   ;;  %s18_s13 = int_to_ptr.vmem [resolvable:$true] %s17_s13 }
   0x4   :  { %s244_s15 = smov 8  }
   0x5   :  { %23 = dma.hbm_to_vmem [thread:$0]  %s16_s11, 512, %s18_s13, [#allocation3], %s243_s14, %s243_s14, %s244_s15  }
   0x6   :  { %236 = dma.done.wait [#allocation3], 512  }
   0x7   :  { %237 = vsyncadd [#allocation3], 4294966784  ;;  %vm32_vm0 = vcmask 130048   ;;  %v28_v0 = vld [vmem:[#allocation2] sm:$0xff]  ;;  %v30_v1 = vld [vmem:[#allocation2 + $0x10] sm:$0xff]  ;;  %s245_s0 = smov [#allocation5]  }
   0x8   :  { %v33_v2 = vsel %vm32_vm0, %v28_v0, -inf  ;;  %v34_v3 = vsel %vm32_vm0, %v30_v1, -inf  ;;  %v29_v5 = vld [vmem:[#allocation2 + $0x8] sm:$0xff]  ;;  %v31_v6 = vld [vmem:[#allocation2 + $0x18] sm:$0xff]  ;;  %s117_s16 = sshll.u32 %s245_s0, 4  ;;  %s119_s19 = sshll.u32 %s289_s1, 4  ;;  %s118_s16 = int_to_ptr.vmem [resolvable:$true] %s117_s16  ;;  %s120_s19 = int_to_ptr.hbm [resolvable:$true] %s119_s19 }
   0x9   :  { %v35_v4 = vmax.f32 %v33_v2, %v34_v3  ;;  %v36_v7 = vsel %vm32_vm0, %v29_v5, -inf  ;;  %v37_v8 = vsel %vm32_vm0, %v31_v6, -inf  ;;  %s246_s1 = smov [#allocation6]   ;;  %s132_s23 = sshll.u32 %s290_s2, 4  ;;  %s133_s23 = int_to_ptr.hbm [resolvable:$true] %s132_s23 }
   0xa   :  { %v38_v9 = vmax.f32 %v36_v7, %v37_v8  ;;  %s130_s20 = sshll.u32 %s246_s1, 4  ;;  %s131_s20 = int_to_ptr.vmem [resolvable:$true] %s130_s20 }
   0xb   :  { %39 = vxpose.xlu0.b32.start [1/2] (short) (narrow) %v35_v4, 16 }
  0x13   :  { %40 = vxpose.xlu0.b32.end [2/2] (short) (narrow) %v38_v9, 16 }
  0xaf   :  { %v55_v10 = vpop.trf.xlu0 }
  0xb0   :  { %71 = vst.msk [vmem:[#allocation5] sm:$0xff] %vm32_vm0, %v55_v10  ;;  %v73_v11 = vsub.f32 0.0, %v55_v10 }
  0xb2   :  { %v75_v12 = vmul.f32 1.442695, %v73_v11 }
  0xb4   :  { %156 = vpow2.f32 %v75_v12 }
  0xb7   :  { %v56_v13 = vpop.trf.xlu0 }
  0xb8   :  { %72 = vst.msk [vmem:[#allocation5 + $0x8] sm:$0xff] %vm32_vm0, %v56_v13  ;;  %v74_v14 = vsub.f32 0.0, %v56_v13 }
  0xb9   :  { %125 = dma.vmem_to_hbm [thread:$0]  %s118_s16, 256, %s120_s19, [#allocation4], %s243_s14, %s243_s14, %s244_s15  }
  0xba   :  { %v157_v15 = vpop.eup %156  ;;  %v77_v16 = vmul.f32 1.442695, %v74_v14 }
  0xbb   :  { %v79_v17 = vadd.f32 1.0, %v157_v15 }
  0xbc   :  { %158 = vpow2.f32 %v77_v16 }
  0xbd   :  { %160 = vrcp.f32 %v79_v17  ;;  %v92_v23 = vand.u32 2147483648, %v79_v17  ;;  %v90_v25 = vand.u32 2147483647, %v79_v17  ;;  %vm86_vm2 = vweird.f32 %v79_v17 }
  0xbf   :  { %v93_v28 = vor.u32 1.1754944e-38, %v92_v23  ;;  %vm91_vm4 = vcmp.eq.f32.partialorder %v90_v25, 8.507059e+37 }
  0xc2   :  { %v159_v18 = vpop.eup %158 }
  0xc3   :  { %v161_v19 = vpop.eup %160  ;;  %v80_v20 = vadd.f32 1.0, %v159_v18 }
  0xc4   :  { %v82_v21 = vmul.f32 %v161_v19, %v79_v17  ;;  %vm87_vm1 = vweird.f32 %v161_v19 }
  0xc5   :  { %162 = vrcp.f32 %v80_v20  ;;  %vm88_vm3 = vmor %vm86_vm2, %vm87_vm1  ;;  %v107_v33 = vand.u32 2147483648, %v80_v20  ;;  %v105_v35 = vand.u32 2147483647, %v80_v20  ;;  %vm101_vm6 = vweird.f32 %v80_v20 }
  0xc6   :  { %v83_v22 = vsub.f32 1.0, %v82_v21 }
  0xc7   :  { %v108_v37 = vor.u32 1.1754944e-38, %v107_v33  ;;  %vm106_vm8 = vcmp.eq.f32.partialorder %v105_v35, 8.507059e+37 }
  0xc8   :  { %v84_v24 = vmul.f32 %v161_v19, %v83_v22 }
  0xca   :  { %v85_v26 = vadd.f32 %v161_v19, %v84_v24 }
  0xcb   :  { %v163_v27 = vpop.eup %162 }
  0xcc   :  { %v97_v29 = vmul.f32 %v163_v27, %v80_v20  ;;  %v89_v30 = vsel %vm88_vm3, %v161_v19, %v85_v26  ;;  %vm102_vm5 = vweird.f32 %v163_v27 }
  0xcd   :  { %v94_v31 = vsel %vm91_vm4, %v93_v28, %v89_v30  ;;  %vm103_vm7 = vmor %vm101_vm6, %vm102_vm5 }
  0xce   :  { %v98_v32 = vsub.f32 1.0, %v97_v29  ;;  %111 = vst.msk [vmem:[#allocation6] sm:$0xff] %vm32_vm0, %v94_v31 }
  0xd0   :  { %v99_v34 = vmul.f32 %v163_v27, %v98_v32 }
  0xd2   :  { %v100_v36 = vadd.f32 %v163_v27, %v99_v34 }
  0xd4   :  { %v104_v38 = vsel %vm103_vm7, %v163_v27, %v100_v36 }
  0xd5   :  { %v109_v39 = vsel %vm106_vm8, %v108_v37, %v104_v38 }
  0xd6   :  { %112 = vst.msk [vmem:[#allocation6 + $0x8] sm:$0xff] %vm32_vm0, %v109_v39 }
  0xd7   :  { %138 = dma.vmem_to_hbm [thread:$0]  %s131_s20, 256, %s133_s23, [#allocation7], %s243_s14, %s243_s14, %s244_s15  }
  0xd8   :  { %238 = dma.done.wait [#allocation4], 256  }
  0xd9   :  { %239 = vsyncadd [#allocation4], 4294967040 }
  0xda   :  { %240 = dma.done.wait [#allocation7], 256  }
  0xdb   :  { %241 = vsyncadd [#allocation7], 4294967040 }
  0xdc   :  { %147 = vsyncpa [#allocation3], 1 }
  0xdd   :  { %148 = vsyncpa [#allocation4], 1 }
  0xde   :  { %149 = vsyncpa [#allocation7], 1 }

</bundles_post_ra>
